<compile_context>
chip_gen: v7x
topology: tpu7x:2x2x1
jax: 0.10.0
libtpu: 0.0.40
codegen_flags: <defaults>
</compile_context>

<pallas_src>
import functools

import jax
import jax.numpy as jnp
from jax.experimental import pallas as pl
from jax.experimental.pallas import tpu as pltpu

LANES = 128
SUBLANES = 8
TARGET_BLOCK_ROWS = 1024      # 1024 x 128 f32 = 512 KiB per input tile
MIN_BLOCKS_FOR_SPLIT = 4      # only 2-way split when padding overhead stays small


def _round_up(x: int, m: int) -> int:
    return ((x + m - 1) // m) * m


def _one_sided_kernel(x_ref, o_ref, *, block_rows):
    """Accumulate per-(sublane, lane) partial sums of min(x, 0) over the grid."""
    @pl.when(pl.program_id(1) == 0)
    def _init():
        o_ref[...] = jnp.zeros_like(o_ref)

    x = x_ref[...].astype(jnp.float32)
    neg = jnp.minimum(x, 0.0)                       # == -relu(-x)
    # (block_rows, 128) -> (block_rows//8, 8, 128); summing axis 0 is a chain of
    # aligned full-vreg VPU adds (no cross-lane shuffles in the hot loop).
    o_ref[...] += jnp.sum(
        neg.reshape(block_rows // SUBLANES, SUBLANES, LANES), axis=0
    )


def one_sided(x: jax.Array) -> jax.Array:
    """Computes -mean(relu(-x)) with the streaming elementwise+reduction in Pallas."""
    total = x.size
    rows_raw = pl.cdiv(total, LANES)
    block_rows = min(TARGET_BLOCK_ROWS, _round_up(rows_raw, SUBLANES))

    num_blocks = pl.cdiv(rows_raw, block_rows)
    num_splits = 2 if num_blocks >= MIN_BLOCKS_FOR_SPLIT else 1

    padded_rows = _round_up(rows_raw, block_rows * num_splits)
    steps = padded_rows // (block_rows * num_splits)
    padded_total = padded_rows * LANES

    x_flat = x.reshape(-1)                          # keep native dtype (no f32 HBM copy)
    if padded_total != total:
        # Zero padding is exact: min(0, 0) == 0 contributes nothing to the sum,
        # and we divide by the *true* element count below.
        x_flat = jnp.pad(x_flat, (0, padded_total - total))
    x2d = x_flat.reshape(padded_rows, LANES)

    kernel = functools.partial(_one_sided_kernel, block_rows=block_rows)

    partials = pl.pallas_call(
        kernel,
        out_shape=jax.ShapeDtypeStruct((num_splits * SUBLANES, LANES), jnp.float32),
        grid_spec=pltpu.PrefetchScalarGridSpec(
            num_scalar_prefetch=0,
            grid=(num_splits, steps),
            in_specs=[
                pl.BlockSpec((block_rows, LANES), lambda c, i: (c * steps + i, 0)),
            ],
            # Lane-dense (8, 128) accumulator block per split; same block index
            # across the "arbitrary" axis -> stays resident in VMEM.
            out_specs=pl.BlockSpec((SUBLANES, LANES), lambda c, i: (c, 0)),
        ),
        compiler_params=pltpu.CompilerParams(
            dimension_semantics=("parallel", "arbitrary"),
        ),
    )(x2d)

    # Final tiny cross-lane reduce + mean over a (num_splits*8, 128) array (XLA).
    return (jnp.sum(partials) / jnp.float32(total)).astype(jnp.float32)


def one_sided_ref(x: jax.Array) -> jax.Array:
    return -jnp.mean(jax.nn.relu(-x.astype(jnp.float32)))


if __name__ == "__main__":
    key = jax.random.PRNGKey(0)
    # Shapes consistent with how ONE_SIDED is used on discriminator scores /
    # feature maps: NCHW batch of activations.
    x = jax.random.normal(key, (2, 4, 16, 16), dtype=jnp.float32)

    out = jax.block_until_ready(one_sided(x))
    ref = jax.block_until_ready(one_sided_ref(x))

    assert out.shape == (), (out.shape,)
    assert jnp.allclose(out, ref, atol=1e-5, rtol=1e-5), (out, ref)
    print("KERNEL_OK")
</pallas_src>

<mosaic_0001>
module attributes {stable_mosaic.version = 11 : i64} {
  func.func @_one_sided_kernel(%arg0: i32, %arg1: i32, %arg2: memref<16x128xf32, #tpu.memory_space<vmem>>, %arg3: memref<8x128xf32, #tpu.memory_space<vmem>>) attributes {dimension_semantics = [#tpu.dimension_semantics<parallel>, #tpu.dimension_semantics<arbitrary>], iteration_bounds = array<i64: 1, 1>, scalar_prefetch = 0 : i64, scratch_operands = 0 : i64, tpu.core_type = #tpu.core_type<tc>, window_params = [{transform_indices = @transform_0, window_bounds = array<i64: 16, 128>}, {transform_indices = @transform_1, window_bounds = array<i64: 8, 128>}]} {
    %c0_i32 = arith.constant 0 : i32
    %0 = arith.cmpi eq, %arg1, %c0_i32 : i32
    %1 = arith.extui %0 : i1 to i32
    %c0_i32_0 = arith.constant 0 : i32
    %2 = arith.cmpi ne, %1, %c0_i32_0 : i32
    scf.if %2 {
      %cst_7 = arith.constant 0.000000e+00 : f32
      %11 = vector.broadcast %cst_7 : f32 to vector<8x128xf32>
      %c0_8 = arith.constant 0 : index
      %c0_9 = arith.constant 0 : index
      %12 = vector.load %arg3[%c0_8, %c0_9] : memref<8x128xf32, #tpu.memory_space<vmem>>, vector<8x128xf32>
      tpu.vector_store %arg3[%c0_8, %c0_9], %11 {strides = array<i32>} : memref<8x128xf32, #tpu.memory_space<vmem>>, vector<8x128xf32>,
    } else {
    }
    %c0 = arith.constant 0 : index
    %c0_1 = arith.constant 0 : index
    %3 = vector.load %arg2[%c0, %c0_1] : memref<16x128xf32, #tpu.memory_space<vmem>>, vector<16x128xf32>
    %cst = arith.constant 0.000000e+00 : f32
    %4 = vector.broadcast %cst : f32 to vector<16x128xf32>
    %5 = arith.minimumf %3, %4 : vector<16x128xf32>
    %c0_2 = arith.constant 0 : index
    %c0_3 = arith.constant 0 : index
    %6 = vector.load %arg3[%c0_2, %c0_3] : memref<8x128xf32, #tpu.memory_space<vmem>>, vector<8x128xf32>
    %7 = vector.shape_cast %5 : vector<16x128xf32> to vector<2x8x128xf32>
    %cst_4 = arith.constant dense<0.000000e+00> : vector<8x128xf32>
    %8 = vector.multi_reduction <add>, %7, %cst_4 [0] : vector<2x8x128xf32> to vector<8x128xf32>
    %9 = arith.addf %6, %8 : vector<8x128xf32>
    %c0_5 = arith.constant 0 : index
    %c0_6 = arith.constant 0 : index
    %10 = vector.load %arg3[%c0_5, %c0_6] : memref<8x128xf32, #tpu.memory_space<vmem>>, vector<8x128xf32>
    tpu.vector_store %arg3[%c0_5, %c0_6], %9 {strides = array<i32>} : memref<8x128xf32, #tpu.memory_space<vmem>>, vector<8x128xf32>,
    return
  }
  func.func @transform_0(%arg0: i32, %arg1: i32) -> (i32, i32) {
    %c1_i32 = arith.constant 1 : i32
    %0 = arith.muli %arg0, %c1_i32 : i32
    %1 = arith.addi %0, %arg1 : i32
    %c0_i32 = arith.constant 0 : i32
    %c0_i32_0 = arith.constant 0 : i32
    return %1, %c0_i32 : i32, i32
  }
  func.func @transform_1(%arg0: i32, %arg1: i32) -> (i32, i32) {
    %c0_i32 = arith.constant 0 : i32
    %c0_i32_0 = arith.constant 0 : i32
    return %arg0, %c0_i32 : i32, i32
  }
}

</mosaic_0001>

<bundles_post_ra>
// kernel: tpu_custom_call.1
= control target key start
LH: loop header
LB: loop body
LE: loop exit
PB: predicated region body
PF: predicated region fallthrough
CT: control target
= control target key end

     0   :  { %6 = vsyncpa [#allocation3], 0  ;;  %s148_s0 = inlined_call_operand.hbm [shape: f32[16,128], index: 0, kind: input, shape index: {}]   ;;  %s149_s1 = inlined_call_operand.hbm [shape: f32[8,128], index: 1, kind: output, shape index: {}]  }
   0x1   :  { %7 = vsyncpa [#allocation4], 0  ;;  %s110_s6 = smov [#allocation2]   ;;  %s62_s10 = scalar_lea.hbm %s148_s0, 256 }
   0x2   :  { %s17_s7 = sshll.u32 %s110_s6, 4  ;;  %p63_p0 = scmp.ne.s32.totalorder %s148_s0, %s62_s10  ;;  %s18_s7 = int_to_ptr.vmem [resolvable:$true] %s17_s7 }
   0x3   :  { %p66_p1 = scmp.lt.u32.totalorder %s62_s10, %s148_s0 }
   0x5   :  { %p68_p2 = pnand %p66_p1, %p63_p0 }
   0x7   :  { %71 = shalt.err (!%p68_p2)
}
   0x8   :  { %s72_s15 = scalar_lea.vmem %s18_s7, 256  ;;  %p77_p4 = scmp.lt.s32.totalorder %s18_s7, %s18_s7 }
   0x9   :  { %p73_p3 = scmp.ne.s32.totalorder %s18_s7, %s72_s15  ;;  %p78_p5 = scmp.lt.s32.totalorder %s72_s15, %s72_s15 }
   0xb   :  { %p79_p6 = por %p78_p5, %p77_p4 }
   0xd   :  { %p80_p7 = pnand %p79_p6, %p73_p3 }
   0xf   :  { %83 = shalt.err (!%p80_p7)
}
  0x10   :  { %s111_s16 = smov 128   ;;  %s112_s17 = smov 8  }
  0x11   :  { %23 = dma.hbm_to_vmem [thread:$0]  %s148_s0, 256, %s18_s7, [#allocation3], %s111_s16, %s111_s16, %s112_s17  }
  0x12   :  { %106 = dma.done.wait [#allocation3], 256  }
  0x13   :  { %107 = vsyncadd [#allocation3], 4294967040  ;;  %v34_v0 = vld [vmem:[#allocation2] sm:$0xff]  ;;  %v35_v1 = vld [vmem:[#allocation2 + $0x8] sm:$0xff]  ;;  %s113_s20 = smov [#allocation5]  }
  0x14   :  { %v36_v2 = vmin.f32 %v34_v0, 0.0  ;;  %v37_v3 = vmin.f32 %v35_v1, 0.0  ;;  %s48_s21 = sshll.u32 %s113_s20, 4  ;;  %s49_s21 = int_to_ptr.vmem [resolvable:$true] %s48_s21 }
  0x15   :  { %s84_s22 = scalar_lea.vmem %s49_s21, 128  ;;  %p89_p9 = scmp.lt.s32.totalorder %s49_s21, %s49_s21 }
  0x16   :  { %v39_v4 = vadd.f32 %v37_v3, %v36_v2  ;;  %p85_p8 = scmp.ne.s32.totalorder %s49_s21, %s84_s22  ;;  %p90_p10 = scmp.lt.s32.totalorder %s84_s22, %s84_s22 }
  0x18   :  { %41 = vst [vmem:[#allocation5] sm:$0xff] %v39_v4  ;;  %p91_p11 = por %p90_p10, %p89_p9 }
  0x1a   :  { %p92_p12 = pnand %p91_p11, %p85_p8 }
  0x1c   :  { %95 = shalt.err (!%p92_p12)
}
  0x1d   :  { %s96_s24 = scalar_lea.hbm %s149_s1, 128 }
  0x1e   :  { %p97_p13 = scmp.ne.s32.totalorder %s149_s1, %s96_s24  ;;  %p100_p0 = scmp.lt.u32.totalorder %s96_s24, %s149_s1 }
  0x20   :  { %p102_p1 = pnand %p100_p0, %p97_p13 }
  0x22   :  { %105 = shalt.err (!%p102_p1)
}
  0x23   :  { %51 = dma.vmem_to_hbm [thread:$0]  %s49_s21, 128, %s149_s1, [#allocation4]  }
  0x24   :  { %108 = dma.done.wait [#allocation4], 128  }
  0x25   :  { %109 = vsyncadd [#allocation4], 4294967168 }
  0x26   :  { %55 = vsyncpa [#allocation3], 1 }
  0x27   :  { %56 = vsyncpa [#allocation4], 1 }

</bundles_post_ra>
